<compile_context>
chip_gen: v7x
topology: tpu7x:2x2x1
jax: 0.10.0
libtpu: 0.0.40
codegen_flags: <defaults>
</compile_context>

<pallas_src>
import jax
import jax.numpy as jnp
from jax.experimental import pallas as pl
from jax.experimental.pallas import tpu as pltpu

_SUBLANE = 8


def _round_up(x, m):
    return ((x + m - 1) // m) * m


def _ffn_kernel(x_ref, w1_ref, b1_ref, w2_ref, b2_ref, w3_ref, b3_ref, o_ref):
    # Three MXU matmuls with f32 accumulation; bias-add + ReLU epilogues in f32.
    cd = w1_ref.dtype                                 # compute dtype (bf16 or f32)
    x = x_ref[...].astype(cd)

    h = jnp.dot(x, w1_ref[...], preferred_element_type=jnp.float32) + b1_ref[...]
    h = jnp.maximum(h, 0.0)

    h = jnp.dot(h.astype(cd), w2_ref[...], preferred_element_type=jnp.float32) + b2_ref[...]
    h = jnp.maximum(h, 0.0)

    h = jnp.dot(h.astype(cd), w3_ref[...], preferred_element_type=jnp.float32) + b3_ref[...]
    h = jnp.maximum(h, 0.0)

    o_ref[...] = h.astype(o_ref.dtype)


def prepare_params(params, compute_dtype=jnp.bfloat16):
    """One-time param prep: cast weights to the MXU compute dtype, keep biases
    f32 (they are added to the f32 accumulator) and reshape them to (1, dim)."""
    def prep(w, b):
        return w.astype(compute_dtype), b.reshape(1, -1).astype(jnp.float32)

    w1, b1 = prep(params["w1"], params["b1"])
    w2, b2 = prep(params["w2"], params["b2"])
    w3, b3 = prep(params["w3"], params["b3"])
    return (w1, b1, w2, b2, w3, b3)


def feedforward(x, prepared, *, tile_b=2048):
    """x: (B, in_dim). Returns (B, out_dim) float32.

    `prepared` is the output of prepare_params(). x is streamed through VMEM in
    batch tiles (double-buffered by Pallas); weights/biases stay VMEM-resident.
    """
    w1, b1, w2, b2, w3, b3 = prepared
    B, in_dim = x.shape
    out_dim = w3.shape[1]

    # Sublane-aligned batch tile; ragged final block handled by Pallas masking.
    tb = min(tile_b, _round_up(B, _SUBLANE))
    tb = _round_up(tb, _SUBLANE)
    grid = (pl.cdiv(B, tb),)

    # Weights/biases: constant index_map -> DMA'd once, VMEM-resident.
    def resident(a):
        nd = a.ndim
        return pl.BlockSpec(a.shape, lambda i, _n=nd: (0,) * _n)

    return pl.pallas_call(
        _ffn_kernel,
        out_shape=jax.ShapeDtypeStruct((B, out_dim), jnp.float32),
        grid=grid,
        in_specs=[
            pl.BlockSpec((tb, in_dim), lambda i: (i, 0)),   # streamed activations
            resident(w1), resident(b1),
            resident(w2), resident(b2),
            resident(w3), resident(b3),
        ],
        out_specs=pl.BlockSpec((tb, out_dim), lambda i: (i, 0)),
        compiler_params=pltpu.CompilerParams(
            dimension_semantics=("parallel",),
        ),
    )(x, w1, b1, w2, b2, w3, b3)


def init_params(key, in_dim, out_dim, hidden=64):
    """Deterministic synthetic init (uniform, roughly PyTorch's default Linear init).

    Weights stored as (in_features, out_features) so y = x @ W + b matches
    nn.Linear(x) = x @ W_pt.T + b with W_pt of shape (out, in)."""
    ks = jax.random.split(key, 6)

    def linear(kw, kb, fan_in, fan_out):
        bound = 1.0 / jnp.sqrt(fan_in)
        w = jax.random.uniform(kw, (fan_in, fan_out), jnp.float32, -bound, bound)
        b = jax.random.uniform(kb, (fan_out,), jnp.float32, -bound, bound)
        return w, b

    w1, b1 = linear(ks[0], ks[1], in_dim, hidden)
    w2, b2 = linear(ks[2], ks[3], hidden, hidden)
    w3, b3 = linear(ks[4], ks[5], hidden, out_dim)
    return {"w1": w1, "b1": b1, "w2": w2, "b2": b2, "w3": w3, "b3": b3}


def feedforward_ref(x, p):
    hi = jax.lax.Precision.HIGHEST
    h = jnp.maximum(jnp.dot(x, p["w1"], precision=hi) + p["b1"], 0.0)
    h = jnp.maximum(jnp.dot(h, p["w2"], precision=hi) + p["b2"], 0.0)
    return jnp.maximum(jnp.dot(h, p["w3"], precision=hi) + p["b3"], 0.0)


if __name__ == "__main__":
    key = jax.random.PRNGKey(0)
    k_x, k_p, k_x2 = jax.random.split(key, 3)

    batch, in_dim, out_dim = 8, 32, 8
    x = jax.random.normal(k_x, (batch, in_dim), jnp.float32)
    params = init_params(k_p, in_dim, out_dim)
    ref = feedforward_ref(x, params)

    # f32 compute path, single tile (tiny batch) — tight tolerance.
    p_f32 = prepare_params(params, compute_dtype=jnp.float32)
    out = jax.block_until_ready(feedforward(x, p_f32))
    assert out.shape == (batch, out_dim)
    assert jnp.allclose(out, ref, atol=1e-3, rtol=1e-3), "mismatch vs reference (f32, B=8)"

    # f32 compute path, multi-tile with ragged final block (grid=(3,), 300 = 2*128 + 44).
    batch2 = 300
    x2 = jax.random.normal(k_x2, (batch2, in_dim), jnp.float32)
    ref2 = feedforward_ref(x2, params)
    out2 = jax.block_until_ready(feedforward(x2, p_f32, tile_b=128))
    assert out2.shape == (batch2, out_dim)
    assert jnp.allclose(out2, ref2, atol=1e-3, rtol=1e-3), "mismatch vs reference (f32, B=300)"

    # Default bf16 compute path (f32 accumulation) — loosened tolerance vs f32 reference.
    p_bf16 = prepare_params(params)
    out3 = jax.block_until_ready(feedforward(x2, p_bf16))
    assert out3.shape == (batch2, out_dim)
    assert jnp.allclose(out3, ref2, atol=5e-2, rtol=5e-2), "mismatch vs reference (bf16, B=300)"

    print("KERNEL_OK")
</pallas_src>

<mosaic_0001>
module attributes {stable_mosaic.version = 11 : i64} {
  func.func @_ffn_kernel(%arg0: i32, %arg1: memref<8x32xf32, #tpu.memory_space<vmem>>, %arg2: memref<32x64xf32, #tpu.memory_space<vmem>>, %arg3: memref<1x64xf32, #tpu.memory_space<vmem>>, %arg4: memref<64x64xf32, #tpu.memory_space<vmem>>, %arg5: memref<1x64xf32, #tpu.memory_space<vmem>>, %arg6: memref<64x8xf32, #tpu.memory_space<vmem>>, %arg7: memref<1x8xf32, #tpu.memory_space<vmem>>, %arg8: memref<8x8xf32, #tpu.memory_space<vmem>>) attributes {dimension_semantics = [#tpu.dimension_semantics<parallel>], iteration_bounds = array<i64: 1>, scalar_prefetch = 0 : i64, scratch_operands = 0 : i64, tpu.core_type = #tpu.core_type<tc>, window_params = [{transform_indices = @transform_0, window_bounds = array<i64: 8, 32>}, {pipeline_mode = #tpu.pipeline_mode<synchronous>, transform_indices = @transform_1, window_bounds = array<i64: 32, 64>}, {pipeline_mode = #tpu.pipeline_mode<synchronous>, transform_indices = @transform_2, window_bounds = array<i64: 1, 64>}, {pipeline_mode = #tpu.pipeline_mode<synchronous>, transform_indices = @transform_3, window_bounds = array<i64: 64, 64>}, {pipeline_mode = #tpu.pipeline_mode<synchronous>, transform_indices = @transform_4, window_bounds = array<i64: 1, 64>}, {pipeline_mode = #tpu.pipeline_mode<synchronous>, transform_indices = @transform_5, window_bounds = array<i64: 64, 8>}, {pipeline_mode = #tpu.pipeline_mode<synchronous>, transform_indices = @transform_6, window_bounds = array<i64: 1, 8>}, {transform_indices = @transform_7, window_bounds = array<i64: 8, 8>}]} {
    %c0 = arith.constant 0 : index
    %c0_0 = arith.constant 0 : index
    %0 = vector.load %arg1[%c0, %c0_0] : memref<8x32xf32, #tpu.memory_space<vmem>>, vector<8x32xf32>
    %c0_1 = arith.constant 0 : index
    %c0_2 = arith.constant 0 : index
    %1 = vector.load %arg2[%c0_1, %c0_2] : memref<32x64xf32, #tpu.memory_space<vmem>>, vector<32x64xf32>
    %cst = arith.constant dense<0.000000e+00> : vector<8x64xf32>
    %2 = tpu.matmul %0, %1, %cst {dimension_numbers = #tpu.dot_dimension_numbers<[1], [0], [0], [1], [0, 0, 1, 1], [], []>} : vector<8x32xf32>, vector<32x64xf32>, vector<8x64xf32> -> vector<8x64xf32>
    %c0_3 = arith.constant 0 : index
    %c0_4 = arith.constant 0 : index
    %3 = vector.load %arg3[%c0_3, %c0_4] : memref<1x64xf32, #tpu.memory_space<vmem>>, vector<1x64xf32>
    %4 = vector.broadcast %3 : vector<1x64xf32> to vector<8x64xf32>
    %5 = arith.addf %2, %4 : vector<8x64xf32>
    %cst_5 = arith.constant 0.000000e+00 : f32
    %6 = vector.broadcast %cst_5 : f32 to vector<8x64xf32>
    %7 = arith.maximumf %5, %6 : vector<8x64xf32>
    %c0_6 = arith.constant 0 : index
    %c0_7 = arith.constant 0 : index
    %8 = vector.load %arg4[%c0_6, %c0_7] : memref<64x64xf32, #tpu.memory_space<vmem>>, vector<64x64xf32>
    %cst_8 = arith.constant dense<0.000000e+00> : vector<8x64xf32>
    %9 = tpu.matmul %7, %8, %cst_8 {dimension_numbers = #tpu.dot_dimension_numbers<[1], [0], [0], [1], [0, 0, 1, 1], [], []>} : vector<8x64xf32>, vector<64x64xf32>, vector<8x64xf32> -> vector<8x64xf32>
    %c0_9 = arith.constant 0 : index
    %c0_10 = arith.constant 0 : index
    %10 = vector.load %arg5[%c0_9, %c0_10] : memref<1x64xf32, #tpu.memory_space<vmem>>, vector<1x64xf32>
    %11 = vector.broadcast %10 : vector<1x64xf32> to vector<8x64xf32>
    %12 = arith.addf %9, %11 : vector<8x64xf32>
    %cst_11 = arith.constant 0.000000e+00 : f32
    %13 = vector.broadcast %cst_11 : f32 to vector<8x64xf32>
    %14 = arith.maximumf %12, %13 : vector<8x64xf32>
    %c0_12 = arith.constant 0 : index
    %c0_13 = arith.constant 0 : index
    %15 = vector.load %arg6[%c0_12, %c0_13] : memref<64x8xf32, #tpu.memory_space<vmem>>, vector<64x8xf32>
    %cst_14 = arith.constant dense<0.000000e+00> : vector<8x8xf32>
    %16 = tpu.matmul %14, %15, %cst_14 {dimension_numbers = #tpu.dot_dimension_numbers<[1], [0], [0], [1], [0, 0, 1, 1], [], []>} : vector<8x64xf32>, vector<64x8xf32>, vector<8x8xf32> -> vector<8x8xf32>
    %c0_15 = arith.constant 0 : index
    %c0_16 = arith.constant 0 : index
    %17 = vector.load %arg7[%c0_15, %c0_16] : memref<1x8xf32, #tpu.memory_space<vmem>>, vector<1x8xf32>
    %18 = vector.broadcast %17 : vector<1x8xf32> to vector<8x8xf32>
    %19 = arith.addf %16, %18 : vector<8x8xf32>
    %cst_17 = arith.constant 0.000000e+00 : f32
    %20 = vector.broadcast %cst_17 : f32 to vector<8x8xf32>
    %21 = arith.maximumf %19, %20 : vector<8x8xf32>
    %c0_18 = arith.constant 0 : index
    %c0_19 = arith.constant 0 : index
    %22 = vector.load %arg8[%c0_18, %c0_19] : memref<8x8xf32, #tpu.memory_space<vmem>>, vector<8x8xf32>
    tpu.vector_store %arg8[%c0_18, %c0_19], %21 {strides = array<i32>} : memref<8x8xf32, #tpu.memory_space<vmem>>, vector<8x8xf32>,
    return
  }
  func.func @transform_0(%arg0: i32) -> (i32, i32) {
    %c0_i32 = arith.constant 0 : i32
    %c0_i32_0 = arith.constant 0 : i32
    return %arg0, %c0_i32 : i32, i32
  }
  func.func @transform_1(%arg0: i32) -> (i32, i32) {
    %c0_i32 = arith.constant 0 : i32
    %c0_i32_0 = arith.constant 0 : i32
    %c0_i32_1 = arith.constant 0 : i32
    return %c0_i32, %c0_i32_0 : i32, i32
  }
  func.func @transform_2(%arg0: i32) -> (i32, i32) {
    %c0_i32 = arith.constant 0 : i32
    %c0_i32_0 = arith.constant 0 : i32
    %c0_i32_1 = arith.constant 0 : i32
    return %c0_i32, %c0_i32_0 : i32, i32
  }
  func.func @transform_3(%arg0: i32) -> (i32, i32) {
    %c0_i32 = arith.constant 0 : i32
    %c0_i32_0 = arith.constant 0 : i32
    %c0_i32_1 = arith.constant 0 : i32
    return %c0_i32, %c0_i32_0 : i32, i32
  }
  func.func @transform_4(%arg0: i32) -> (i32, i32) {
    %c0_i32 = arith.constant 0 : i32
    %c0_i32_0 = arith.constant 0 : i32
    %c0_i32_1 = arith.constant 0 : i32
    return %c0_i32, %c0_i32_0 : i32, i32
  }
  func.func @transform_5(%arg0: i32) -> (i32, i32) {
    %c0_i32 = arith.constant 0 : i32
    %c0_i32_0 = arith.constant 0 : i32
    %c0_i32_1 = arith.constant 0 : i32
    return %c0_i32, %c0_i32_0 : i32, i32
  }
  func.func @transform_6(%arg0: i32) -> (i32, i32) {
    %c0_i32 = arith.constant 0 : i32
    %c0_i32_0 = arith.constant 0 : i32
    %c0_i32_1 = arith.constant 0 : i32
    return %c0_i32, %c0_i32_0 : i32, i32
  }
  func.func @transform_7(%arg0: i32) -> (i32, i32) {
    %c0_i32 = arith.constant 0 : i32
    %c0_i32_0 = arith.constant 0 : i32
    return %arg0, %c0_i32 : i32, i32
  }
}

</mosaic_0001>

<bundles_post_ra>
// kernel: tpu_custom_call.1
= control target key start
LH: loop header
LB: loop body
LE: loop exit
PB: predicated region body
PF: predicated region fallthrough
CT: control target
= control target key end

     0   :  { %12 = vsyncpa [#allocation3], 0  ;;  %s621_s0 = inlined_call_operand.vmem [shape: f32[8,32], index: 0, kind: input, shape index: {}]   ;;  %s622_s1 = inlined_call_operand.hbm [shape: f32[32,64], index: 1, kind: input, shape index: {}]   ;;  %s623_s2 = inlined_call_operand.vmem [shape: f32[1,64], index: 2, kind: input, shape index: {}]   ;;  %s624_s3 = inlined_call_operand.vmem [shape: f32[64,64], index: 3, kind: input, shape index: {}]   ;;  %s625_s4 = inlined_call_operand.vmem [shape: f32[1,64], index: 4, kind: input, shape index: {}]   ;;  %s626_s5 = inlined_call_operand.vmem [shape: f32[64,8], index: 5, kind: input, shape index: {}]   ;;  %s627_s6 = inlined_call_operand.vmem [shape: f32[1,8], index: 6, kind: input, shape index: {}]   ;;  %s628_s7 = inlined_call_operand.hbm [shape: f32[8,8], index: 7, kind: output, shape index: {}]  }
   0x1   :  { %13 = vsyncpa [#allocation4], 0  ;;  %s487_s24 = smov [#allocation2]   ;;  %s439_s28 = scalar_lea.hbm %s622_s1, 512 }
   0x2   :  { %s21_s25 = sshll.u32 %s487_s24, 4  ;;  %p440_p0 = scmp.ne.s32.totalorder %s622_s1, %s439_s28  ;;  %s22_s25 = int_to_ptr.vmem [resolvable:$true] %s21_s25 }
   0x3   :  { %p443_p1 = scmp.lt.u32.totalorder %s439_s28, %s622_s1 }
   0x5   :  { %p445_p2 = pnand %p443_p1, %p440_p0 }
   0x7   :  { %448 = shalt.err (!%p445_p2)
}
   0x8   :  { %s449_s10 = scalar_lea.vmem %s22_s25, 512  ;;  %p454_p4 = scmp.lt.s32.totalorder %s22_s25, %s22_s25 }
   0x9   :  { %p450_p3 = scmp.ne.s32.totalorder %s22_s25, %s449_s10  ;;  %p455_p5 = scmp.lt.s32.totalorder %s449_s10, %s449_s10 }
   0xb   :  { %p456_p6 = por %p455_p5, %p454_p4 }
   0xd   :  { %p457_p7 = pnand %p456_p6, %p450_p3 }
   0xf   :  { %460 = shalt.err (!%p457_p7)
}
  0x10   :  { %s488_s11 = smov 128   ;;  %s489_s12 = smov 8  }
  0x11   :  { %27 = dma.hbm_to_vmem [thread:$0]  %s622_s1, 512, %s22_s25, [#allocation3], %s488_s11, %s488_s11, %s489_s12  }
  0x12   :  { %483 = dma.done.wait [#allocation3], 512  }
  0x13   :  { %484 = vsyncadd [#allocation3], 4294966784  ;;  %v490_v0 = vmov 0.0|0.0   ;;  %vm491_vm0 = vmmov 0   ;;  %v492_v1 = vmov 0.0   ;;  %v42_v2 = vld [vmem:[#allocation2] sm:$0xff] }
  0x14   :  { %402 = vmatprep.subr.bf16.mxu0 %v490_v0  ;;  %361 = vmatprep.mubr.msk.f32.mxu0 %vm491_vm0, %v492_v1  ;;  %v43_v3 = vld [vmem:[#allocation2 + $0x8] sm:$0xff]  ;;  %v44_v4 = vld [vmem:[#allocation2 + $0x10] sm:$0xff]  ;;  %v45_v6 = vld [vmem:[#allocation2 + $0x18] sm:$0xff]  ;;  %vm53_vm1 = vcmask 261120   ;;  %vm143_vm2 = vcmask 523264   ;;  %s493_s27 = smov [#allocation5]  }
  0x15   :  { %408 = vmatprep.subr.bf16.mxu1 %v490_v0  ;;  %380 = vmatprep.mubr.msk.f32.mxu1 %vm491_vm0, %v492_v1  ;;  %v403_v5 = vpack.c.bf16 %v43_v3, %v42_v2  ;;  %v128_v7 = vld [vmem:[%s624_s3] sm:$0xff]  ;;  %v129_v8 = vld [vmem:[%s624_s3 + $0x8] sm:$0xff]  ;;  %v130_v9 = vld [vmem:[%s624_s3 + $0x10] sm:$0xff]  ;;  %v406_v11 = vpack.c.bf16 %v45_v6, %v44_v4  ;;  %s315_s28 = sshll.u32 %s493_s27, 4  ;;  %vm307_vm3 = vcmask 64512   ;;  %s316_s28 = int_to_ptr.vmem [resolvable:$true] %s315_s28 }
  0x16   :  { %v131_v10 = vld [vmem:[%s624_s3 + $0x18] sm:$0xff]  ;;  %v409_v12 = vpack.c.bf16 %v129_v8, %v128_v7  ;;  %v132_v14 = vld [vmem:[%s624_s3 + $0x20] sm:$0xff]  ;;  %v133_v15 = vld [vmem:[%s624_s3 + $0x28] sm:$0xff]  ;;  %p466_p9 = scmp.lt.s32.totalorder %s316_s28, %s316_s28 }
  0x17   :  { %404 = vmatpush3.bf16.msra.mxu0 %v403_v5  ;;  %v412_v13 = vpack.c.bf16 %v131_v10, %v130_v9  ;;  %v41_v16 = vld [vmem:[%s621_s0] sm:$0xff]  ;;  %v415_v17 = vpack.c.bf16 %v133_v15, %v132_v14  ;;  %v134_v18 = vld [vmem:[%s624_s3 + $0x30] sm:$0xff]  ;;  %v135_v19 = vld [vmem:[%s624_s3 + $0x38] sm:$0xff] }
  0x18   :  { %405 = vmatprep.subr.bf16.mxu0 %v490_v0  ;;  %410 = vmatpush3.bf16.msra.mxu1 %v409_v12  ;;  %v418_v20 = vpack.c.bf16 %v135_v19, %v134_v18  ;;  %v218_v21 = vld [vmem:[%s626_s5] sm:$0xff]  ;;  %v219_v22 = vld [vmem:[%s626_s5 + $0x8] sm:$0xff]  ;;  %v220_v23 = vld [vmem:[%s626_s5 + $0x10] sm:$0xff] }
  0x19   :  { %411 = vmatprep.subr.bf16.mxu1 %v490_v0  ;;  %v421_v24 = vpack.c.bf16 %v219_v22, %v218_v21  ;;  %v221_v25 = vld [vmem:[%s626_s5 + $0x18] sm:$0xff]  ;;  %v222_v27 = vld [vmem:[%s626_s5 + $0x20] sm:$0xff]  ;;  %v223_v28 = vld [vmem:[%s626_s5 + $0x28] sm:$0xff] }
  0x1a   :  { %v424_v26 = vpack.c.bf16 %v221_v25, %v220_v23  ;;  %v427_v29 = vpack.c.bf16 %v223_v28, %v222_v27  ;;  %v324_v30 = vld [vmem:[%s623_s2] ss:$0 sm:$0xff]  ;;  %v224_v35 = vld [vmem:[%s626_s5 + $0x30] sm:$0xff]  ;;  %v225_v36 = vld [vmem:[%s626_s5 + $0x38] sm:$0xff]  ;;  %s461_s5 = scalar_lea.vmem %s316_s28, 128 }
  0x1b   :  { %407 = vmatpush3.bf16.msra.mxu0 %v406_v11  ;;  %v430_v37 = vpack.c.bf16 %v225_v36, %v224_v35  ;;  %v326_v38 = vld [vmem:[%s625_s4] ss:$0 sm:$0xff]  ;;  %p462_p8 = scmp.ne.s32.totalorder %s316_s28, %s461_s5  ;;  %p467_p10 = scmp.lt.s32.totalorder %s461_s5, %s461_s5 }
  0x1c   :  { %420 = vmatprep.subr.bf16.mxu0 %v490_v0  ;;  %413 = vmatpush3.bf16.msra.mxu1 %v412_v13  ;;  %v328_v43 = vld [vmem:[%s627_s6] ss:$0 sm:$0xff] }
  0x1d   :  { %414 = vmatprep.subr.bf16.mxu1 %v490_v0  ;;  %p468_p11 = por %p467_p10, %p466_p9 }
  0x1e   :  { %362 = vmatmul.mubr.msk.f32.vlgmr.msra.gmra.mrb[0].mxu0 %vm53_vm1, %v41_v16 }
  0x1f   :  { %399 = vmatprep.mubr.msk.f32.mxu0 %vm491_vm0, %v492_v1  ;;  %422 = vmatpush3.bf16.msra.mxu0 %v421_v24  ;;  %p469_p12 = pnand %p468_p11, %p462_p8 }
  0x20   :  { %416 = vmatpush3.bf16.msra.mxu1 %v415_v17  ;;  %423 = vmatprep.subr.bf16.mxu0 %v490_v0 }
  0x21   :  { %417 = vmatprep.subr.bf16.mxu1 %v490_v0 }
  0x23   :  { %425 = vmatpush3.bf16.msra.mxu0 %v424_v26 }
  0x24   :  { %419 = vmatpush3.bf16.msra.mxu1 %v418_v20  ;;  %426 = vmatprep.subr.bf16.mxu0 %v490_v0 }
  0x27   :  { %428 = vmatpush3.bf16.msra.mxu0 %v427_v29 }
  0x28   :  { %429 = vmatprep.subr.bf16.mxu0 %v490_v0 }
  0x2b   :  { %431 = vmatpush3.bf16.msra.mxu0 %v430_v37 }
  0xf1   :  { %v123_v31 = vpop.f32.mrb[0].mxu0 }
  0xf2   :  { %v124_v32 = vadd.f32 %v324_v30, %v123_v31  ;;  %v363_v33 = vpop.f32.mrb[1].mxu0 }
  0xf4   :  { %v127_v34 = vmax.f32 %v124_v32, 0.0 }
  0xf6   :  { %381 = vmatmul.mubr.msk.f32.vlgmr.msra.gmra.mrb[0].mxu1 %vm143_vm2, %v127_v34 }
 0x1c9   :  { %v213_v39 = vpop.f32.mrb[0].mxu1 }
 0x1ca   :  { %v214_v40 = vadd.f32 %v326_v38, %v213_v39  ;;  %v382_v41 = vpop.f32.mrb[1].mxu1 }
 0x1cc   :  { %v217_v42 = vmax.f32 %v214_v40, 0.0 }
 0x1ce   :  { %400 = vmatmul.mubr.msk.f32.vlgmr.msra.gmra.mrb[2].mxu0 %vm143_vm2, %v217_v42 }
 0x2a1   :  { %v302_v44 = vpop.f32.mrb[2].mxu0 }
 0x2a2   :  { %v303_v45 = vadd.f32 %v328_v43, %v302_v44  ;;  %v401_v46 = vpop.f32.mrb[3].mxu0 }
 0x2a4   :  { %v306_v47 = vmax.f32 %v303_v45, 0.0 }
 0x2a6   :  { %308 = vst.msk [vmem:[#allocation5] sm:$0xff] %vm307_vm3, %v306_v47 }
 0x2a7   :  { %472 = shalt.err (!%p469_p12)
}
 0x2a8   :  { %s473_s6 = scalar_lea.hbm %s628_s7, 128 }
 0x2a9   :  { %p474_p13 = scmp.ne.s32.totalorder %s628_s7, %s473_s6  ;;  %p477_p0 = scmp.lt.u32.totalorder %s473_s6, %s628_s7 }
 0x2ab   :  { %p479_p1 = pnand %p477_p0, %p474_p13 }
 0x2ad   :  { %482 = shalt.err (!%p479_p1)
}
 0x2ae   :  { %318 = dma.vmem_to_hbm [thread:$0]  %s316_s28, 128, %s628_s7, [#allocation4]  }
 0x2af   :  { %485 = dma.done.wait [#allocation4], 128  }
 0x2b0   :  { %486 = vsyncadd [#allocation4], 4294967168 }
 0x2b1   :  { %322 = vsyncpa [#allocation3], 1 }
 0x2b2   :  { %323 = vsyncpa [#allocation4], 1 }

</bundles_post_ra>
